<compile_context>
chip_gen: v7x
topology: tpu7x:2x2x1
jax: 0.10.0
libtpu: 0.0.40
codegen_flags: <defaults>
</compile_context>

<pallas_src>
import jax
import jax.numpy as jnp
from jax.experimental import pallas as pl
from jax.experimental.pallas import tpu as pltpu


def _make_clamp_kernel(lo, hi):
    """lo/hi are numpy scalars already cast to the input dtype."""

    def kernel(x_ref, o_ref):
        # torch.clamp(x, min, max) == minimum(maximum(x, min), max):
        # the *max* bound is applied last (max_val wins if min_val > max_val),
        # and NaNs propagate through both ops, matching torch.clamp.
        o_ref[...] = jnp.minimum(jnp.maximum(x_ref[...], lo), hi)

    return kernel


_LANE_CANDIDATES = (8192, 4096, 2048, 1024, 512, 256, 128)


def _generation_config():
    """Trace-time TPU-generation-aware tile size / VMEM limit / core count."""
    kind = ""
    try:
        kind = jax.devices()[0].device_kind.lower()
    except Exception:
        pass
    if "v7" in kind:
        # ~3.2 TB/s HBM, 64 MiB VMEM per TC, 2 TCs per chip.
        return dict(tile_bytes=8 * 1024 * 1024,
                    vmem_limit_bytes=48 * 1024 * 1024,
                    multi_core=True)
    if "v6" in kind:
        # ~1.4 TB/s HBM; 4 MiB tiles double-buffered (16 MiB) stay under the
        # 32 MiB scoped-VMEM default, no flag change needed.
        return dict(tile_bytes=4 * 1024 * 1024,
                    vmem_limit_bytes=None,
                    multi_core=False)
    # v5e (16 MiB scoped-VMEM default) and anything unknown: 2 MiB tiles.
    return dict(tile_bytes=2 * 1024 * 1024,
                vmem_limit_bytes=None,
                multi_core=False)


def _balance_tile(total, tile, unit, enable):
    """On multi-TensorCore chips, prefer a grid of >=2 (and even) steps."""
    if not enable or total <= unit:
        return tile
    grid = pl.cdiv(total, tile)
    if grid == 1:
        # Split the single block in two (unit-aligned) so both cores stream.
        tile = pl.cdiv(pl.cdiv(total, 2), unit) * unit
    elif grid % 2 == 1 and grid <= 9 and tile - unit >= unit:
        cand = tile - unit
        if pl.cdiv(total, cand) % 2 == 0:
            tile = cand
    return tile


def limiter_activation(x, min_val, max_val, *, target_tile_bytes=None,
                       donate_input=False):
    """Pallas equivalent of torch.clamp(x, min=min_val, max=max_val)."""
    orig_shape = x.shape
    dtype = x.dtype
    n = x.size
    if n == 0:
        return x

    itemsize = jnp.dtype(dtype).itemsize
    cfg = _generation_config()
    tile_bytes = (target_tile_bytes if target_tile_bytes is not None
                  else cfg["tile_bytes"])
    vmem_limit = cfg["vmem_limit_bytes"]
    balance = cfg["multi_core"] and n * itemsize >= (1 << 20)

    # Clamp bounds as exact-dtype constants (no promotion for int inputs).
    lo = jnp.dtype(dtype).type(min_val)
    hi = jnp.dtype(dtype).type(max_val)
    kernel = _make_clamp_kernel(lo, hi)

    # Sublane multiple per dtype: f32 -> 8 rows, bf16 -> 16, int8/fp8 -> 32.
    sub = max(8, 8 * (4 // itemsize))

    compiler_kwargs = dict(dimension_semantics=("parallel",))
    if vmem_limit is not None:
        compiler_kwargs["vmem_limit_bytes"] = vmem_limit
    alias_kwargs = {"input_output_aliases": {0: 0}} if donate_input else {}
    cost = pl.CostEstimate(flops=0, transcendentals=0,
                           bytes_accessed=2 * n * itemsize)

    # ---- Fast path: flat size divides a wide lane count -> lane-dense 2-D ---
    lanes = next((c for c in _LANE_CANDIDATES if n % c == 0), None)
    if lanes is not None:
        rows = n // lanes
        cap_rows = max(sub, (max(1, tile_bytes // (lanes * itemsize)) // sub) * sub)
        if rows <= sub:
            tile_rows = rows                      # full-dim block (always legal)
        else:
            tile_rows = min(rows, cap_rows)
            tile_rows = _balance_tile(rows, tile_rows, sub, balance)
        grid = (pl.cdiv(rows, tile_rows),)

        x2d = x.reshape(rows, lanes)              # contiguous reshape: no HBM copy
        out2d = pl.pallas_call(
            kernel,
            out_shape=jax.ShapeDtypeStruct((rows, lanes), dtype),
            grid=grid,
            in_specs=[pl.BlockSpec((tile_rows, lanes), lambda i: (i, 0))],
            out_specs=pl.BlockSpec((tile_rows, lanes), lambda i: (i, 0)),
            compiler_params=pltpu.CompilerParams(**compiler_kwargs),
            cost_estimate=cost,
            **alias_kwargs,
        )(x2d)
        return out2d.reshape(orig_shape)

    # ---- Ragged path: stay flat 1-D, let Pallas mask the partial last block.
    # No jnp.pad and no trailing slice, so HBM traffic stays at 1 read + 1 write.
    vreg_elems = 8 * 128 * max(1, 4 // itemsize)  # one packed vreg worth of elems
    if n <= vreg_elems:
        tile_elems = n                            # full-dim block (always legal)
    else:
        cap_elems = max(vreg_elems,
                        (tile_bytes // itemsize) // vreg_elems * vreg_elems)
        tile_elems = min(n, cap_elems)
        tile_elems = _balance_tile(n, tile_elems, vreg_elems, balance)
    grid = (pl.cdiv(n, tile_elems),)

    out = pl.pallas_call(
        kernel,
        out_shape=jax.ShapeDtypeStruct((n,), dtype),
        grid=grid,
        in_specs=[pl.BlockSpec((tile_elems,), lambda i: (i,))],
        out_specs=pl.BlockSpec((tile_elems,), lambda i: (i,)),
        compiler_params=pltpu.CompilerParams(**compiler_kwargs),
        cost_estimate=cost,
        **alias_kwargs,
    )(x.reshape(-1))
    return out.reshape(orig_shape)


if __name__ == "__main__":
    key = jax.random.PRNGKey(0)
    min_val, max_val = -0.5, 0.5

    # Main case: small NCHW activation, f32 (lane-divisible fast path).
    x = jax.random.normal(key, (2, 4, 16, 16), dtype=jnp.float32) * 2.0
    out = jax.block_until_ready(limiter_activation(x, min_val, max_val))
    ref = jnp.clip(x, min_val, max_val)
    assert out.shape == x.shape and out.dtype == x.dtype
    assert jnp.allclose(out, ref), "f32 mismatch vs reference clamp"

    # bf16 case (exercises dtype-aware sublane handling).
    xb = x.astype(jnp.bfloat16)
    outb = jax.block_until_ready(limiter_activation(xb, min_val, max_val))
    refb = jnp.clip(xb, min_val, max_val)
    assert outb.shape == xb.shape and outb.dtype == xb.dtype
    assert jnp.allclose(outb.astype(jnp.float32), refb.astype(jnp.float32)), \
        "bf16 mismatch vs reference clamp"

    # Ragged-size case: flat 1-D masked-final-block path (no pad / slice).
    xr = jax.random.normal(jax.random.PRNGKey(1), (3, 5, 7), dtype=jnp.float32) * 2.0
    outr = jax.block_until_ready(limiter_activation(xr, min_val, max_val))
    refr = jnp.clip(xr, min_val, max_val)
    assert outr.shape == xr.shape and jnp.allclose(outr, refr), \
        "ragged mismatch vs reference clamp"

    print("KERNEL_OK")
</pallas_src>

<mosaic_0001>
module attributes {stable_mosaic.version = 11 : i64} {
  func.func @kernel(%arg0: i32, %arg1: memref<1x2048xf32, #tpu.memory_space<vmem>>, %arg2: memref<1x2048xf32, #tpu.memory_space<vmem>>) attributes {dimension_semantics = [#tpu.dimension_semantics<parallel>], iteration_bounds = array<i64: 1>, scalar_prefetch = 0 : i64, scratch_operands = 0 : i64, tpu.core_type = #tpu.core_type<tc>, window_params = [{transform_indices = @transform_0, window_bounds = array<i64: 1, 2048>}, {transform_indices = @transform_1, window_bounds = array<i64: 1, 2048>}]} {
    %c0 = arith.constant 0 : index
    %c0_0 = arith.constant 0 : index
    %0 = vector.load %arg1[%c0, %c0_0] : memref<1x2048xf32, #tpu.memory_space<vmem>>, vector<1x2048xf32>
    %cst = arith.constant -5.000000e-01 : f32
    %1 = vector.broadcast %cst : f32 to vector<1x2048xf32>
    %2 = arith.maximumf %0, %1 : vector<1x2048xf32>
    %cst_1 = arith.constant 5.000000e-01 : f32
    %3 = vector.broadcast %cst_1 : f32 to vector<1x2048xf32>
    %4 = arith.minimumf %2, %3 : vector<1x2048xf32>
    %c0_2 = arith.constant 0 : index
    %c0_3 = arith.constant 0 : index
    %5 = vector.load %arg2[%c0_2, %c0_3] : memref<1x2048xf32, #tpu.memory_space<vmem>>, vector<1x2048xf32>
    tpu.vector_store %arg2[%c0_2, %c0_3], %4 {strides = array<i32>} : memref<1x2048xf32, #tpu.memory_space<vmem>>, vector<1x2048xf32>,
    return
  }
  func.func @transform_0(%arg0: i32) -> (i32, i32) {
    %c0_i32 = arith.constant 0 : i32
    %c0_i32_0 = arith.constant 0 : i32
    return %arg0, %c0_i32 : i32, i32
  }
  func.func @transform_1(%arg0: i32) -> (i32, i32) {
    %c0_i32 = arith.constant 0 : i32
    %c0_i32_0 = arith.constant 0 : i32
    return %arg0, %c0_i32 : i32, i32
  }
}

</mosaic_0001>

<bundles_post_ra>
// kernel: tpu_custom_call.1
= control target key start
LH: loop header
LB: loop body
LE: loop exit
PB: predicated region body
PF: predicated region fallthrough
CT: control target
= control target key end

     0   :  { %6 = vsyncpa [#allocation3], 0  ;;  %s132_s0 = inlined_call_operand.hbm [shape: f32[1,2048], index: 0, kind: input, shape index: {}]   ;;  %s133_s1 = inlined_call_operand.hbm [shape: f32[1,2048], index: 1, kind: output, shape index: {}]  }
   0x1   :  { %7 = vsyncpa [#allocation4], 0  ;;  %s96_s6 = smov [#allocation2]   ;;  %s48_s10 = scalar_lea.hbm %s132_s0, 256 }
   0x2   :  { %s14_s7 = sshll.u32 %s96_s6, 4  ;;  %p49_p0 = scmp.ne.s32.totalorder %s132_s0, %s48_s10  ;;  %s15_s7 = int_to_ptr.vmem [resolvable:$true] %s14_s7 }
   0x3   :  { %p52_p1 = scmp.lt.u32.totalorder %s48_s10, %s132_s0 }
   0x5   :  { %p54_p2 = pnand %p52_p1, %p49_p0 }
   0x7   :  { %57 = shalt.err (!%p54_p2)
}
   0x8   :  { %s58_s15 = scalar_lea.vmem %s15_s7, 256  ;;  %p63_p4 = scmp.lt.s32.totalorder %s15_s7, %s15_s7 }
   0x9   :  { %p59_p3 = scmp.ne.s32.totalorder %s15_s7, %s58_s15  ;;  %p64_p5 = scmp.lt.s32.totalorder %s58_s15, %s58_s15 }
   0xb   :  { %p65_p6 = por %p64_p5, %p63_p4 }
   0xd   :  { %p66_p7 = pnand %p65_p6, %p59_p3 }
   0xf   :  { %69 = shalt.err (!%p66_p7)
}
  0x10   :  { %17 = dma.hbm_to_vmem [thread:$0]  %s132_s0, 256, %s15_s7, [#allocation3]  }
  0x11   :  { %92 = dma.done.wait [#allocation3], 256  }
  0x12   :  { %93 = vsyncadd [#allocation3], 4294967040  ;;  %s97_s18 = smov [#allocation5]   ;;  %v21_v0 = vld [vmem:[#allocation2] sm:$0xff]  ;;  %v22_v1 = vld [vmem:[#allocation2 + $0x8] sm:$0xff] }
  0x13   :  { %s35_s19 = sshll.u32 %s97_s18, 4  ;;  %v44_v2 = vclamps-f32 %v21_v0, 0.5  ;;  %v45_v3 = vclamps-f32 %v22_v1, 0.5  ;;  %s36_s19 = int_to_ptr.vmem [resolvable:$true] %s35_s19 }
  0x14   :  { %s70_s20 = scalar_lea.vmem %s36_s19, 256  ;;  %p75_p9 = scmp.lt.s32.totalorder %s36_s19, %s36_s19 }
  0x15   :  { %27 = vst [vmem:[#allocation5] sm:$0xff] %v44_v2  ;;  %28 = vst [vmem:[#allocation5 + $0x8] sm:$0xff] %v45_v3  ;;  %p71_p8 = scmp.ne.s32.totalorder %s36_s19, %s70_s20  ;;  %p76_p10 = scmp.lt.s32.totalorder %s70_s20, %s70_s20 }
  0x17   :  { %p77_p11 = por %p76_p10, %p75_p9 }
  0x19   :  { %p78_p12 = pnand %p77_p11, %p71_p8 }
  0x1b   :  { %81 = shalt.err (!%p78_p12)
}
  0x1c   :  { %s82_s22 = scalar_lea.hbm %s133_s1, 256 }
  0x1d   :  { %p83_p13 = scmp.ne.s32.totalorder %s133_s1, %s82_s22  ;;  %p86_p0 = scmp.lt.u32.totalorder %s82_s22, %s133_s1 }
  0x1f   :  { %p88_p1 = pnand %p86_p0, %p83_p13 }
  0x21   :  { %91 = shalt.err (!%p88_p1)
}
  0x22   :  { %38 = dma.vmem_to_hbm [thread:$0]  %s36_s19, 256, %s133_s1, [#allocation4]  }
  0x23   :  { %94 = dma.done.wait [#allocation4], 256  }
  0x24   :  { %95 = vsyncadd [#allocation4], 4294967040 }
  0x25   :  { %42 = vsyncpa [#allocation3], 1 }
  0x26   :  { %43 = vsyncpa [#allocation4], 1 }

</bundles_post_ra>
